<compile_context>
chip_gen: v7x
topology: tpu7x:2x2x1
jax: 0.10.0
libtpu: 0.0.40
codegen_flags: <defaults>
</compile_context>

<pallas_src>
import jax
import jax.numpy as jnp
from jax.experimental import pallas as pl
from jax.experimental.pallas import tpu as pltpu


def _round_up(x, m):
    return (x + m - 1) // m * m


def _pad_to(a, shape):
    pads = tuple((0, s - d) for d, s in zip(a.shape, shape))
    if all(p == (0, 0) for p in pads):
        return a
    return jnp.pad(a, pads)


def _vmem_capacity_bytes():
    """Physical VMEM per core; conservative (v7x-sized) default if unknown."""
    try:
        cap = getattr(pltpu.get_tpu_info(), "vmem_capacity_bytes", None)
        if cap:
            return int(cap)
    except Exception:
        pass
    return 64 * 1024 * 1024


def _block_spec(shape, index_map, buffer_count=None):
    """BlockSpec, optionally with an explicit pipeline buffer count."""
    if buffer_count is not None:
        try:
            return pl.BlockSpec(shape, index_map,
                                pipeline_mode=pl.Buffered(buffer_count))
        except Exception:
            pass  # older jax without pipeline_mode support: fall through
    return pl.BlockSpec(shape, index_map)


def _make_ffn_kernel(th, weights_resident):
    """Fused fc1 -> 0.8*GELU -> fc2 over grid (row_tile i, hidden_tile k)."""

    def kernel(x_ref, w1_ref, b1_ref, w2_ref, b2_ref, o_ref, acc_ref):
        # x_ref: (tm, Dp); o_ref: (tm, Dp); acc_ref: (tm, Dp) f32 scratch,
        # resident across the hidden (k) axis.
        # resident:  w1_ref (Dp, Hp), b1_ref (1, Hp), w2_ref (Hp, Dp)
        # streamed:  w1_ref (Dp, th), b1_ref (1, th), w2_ref (th, Dp)
        k = pl.program_id(1)

        @pl.when(k == 0)
        def _():
            acc_ref[...] = jnp.broadcast_to(
                b2_ref[...].astype(jnp.float32), acc_ref.shape)

        if weights_resident:
            off = pl.multiple_of(k * th, 128)
            w1 = w1_ref[:, pl.ds(off, th)]
            b1 = b1_ref[:, pl.ds(off, th)]
            w2 = w2_ref[pl.ds(off, th), :]
        else:
            w1 = w1_ref[...]
            b1 = b1_ref[...]
            w2 = w2_ref[...]

        # fc1 partial: native/compute-dtype operands on the MXU, f32 accumulate.
        h = jnp.dot(x_ref[...], w1, preferred_element_type=jnp.float32)
        h = h + b1.astype(jnp.float32)

        # Custom GELU from the PyTorch module: NOTE the 0.8 coefficient (not
        # the standard 0.5) is faithfully reproduced from the source model.
        c1 = jnp.float32(0.7978845608028654)               # sqrt(2/pi)
        c2 = jnp.float32(0.7978845608028654 * 0.044715)    # sqrt(2/pi)*0.044715
        u = h * h
        t = jnp.tanh(h * (c1 + c2 * u))                    # tanh -> EUP slot
        g = (0.8 * h) * (1.0 + t)

        # fc2 partial contribution of this hidden slice; accumulate in f32.
        acc_ref[...] += jnp.dot(g.astype(w2.dtype), w2,
                                preferred_element_type=jnp.float32)

        @pl.when(k == pl.num_programs(1) - 1)
        def _():
            o_ref[...] = acc_ref[...].astype(o_ref.dtype)

    return kernel


def feed_forward_pallas(x, w1, b1, w2, b2, *, tm=None, th=None,
                        compute_dtype=None, weights_resident=None):
    """Fused FeedForward.  x: (B, T, D); w1: (D, H); b1: (H,); w2: (H, D);
    b2: (D,) with H = 4*D.  Weights are pre-transposed relative to nn.Linear
    (i.e. fc.weight.T) so the kernel runs plain row-major matmuls on the MXU.

    compute_dtype: optional MXU operand dtype (e.g. jnp.bfloat16 for f32
    models); accumulation and the GELU math are always f32.
    weights_resident: force (True/False) or auto-select (None) VMEM-resident
    weights vs per-k-step streamed weight tiles.
    """
    B, T, D = x.shape
    H = w1.shape[1]
    M = B * T

    out_dtype = x.dtype
    cdtype = jnp.dtype(compute_dtype) if compute_dtype is not None else jnp.dtype(x.dtype)
    w_item = cdtype.itemsize
    out_item = jnp.dtype(out_dtype).itemsize
    row_align = 16 if w_item == 2 else 8            # bf16 packs 16 rows / vreg

    # --- lane-aligned padded sizes (zero padding is exact for this op) -------
    Dp = _round_up(D, 128)
    Hp0 = _round_up(H, 128)
    th_req = max(128, _round_up(min(th if th is not None else 1024, Hp0), 128))
    k_steps = pl.cdiv(Hp0, th_req)
    th_sel = _round_up(pl.cdiv(Hp0, k_steps), 128)  # keep hidden padding modest
    Hp = th_sel * k_steps

    # --- VMEM budget / weight-residency decision -----------------------------
    vmem_cap = _vmem_capacity_bytes()
    budget = min(vmem_cap - (16 << 20), 100 << 20)  # leave Mosaic scratch room

    def _tile_bytes(tm_, resident):
        b = 2 * tm_ * Dp * w_item                   # x tile, double-buffered
        b += 2 * tm_ * Dp * out_item                # out tile, double-buffered
        b += tm_ * Dp * 4                           # f32 accumulator scratch
        if resident:
            b += 2 * 2 * Dp * Hp * w_item           # W1+W2 (assume 2 buffers)
            b += 2 * (Hp + Dp) * 4                  # biases (f32)
        else:
            b += 2 * 2 * Dp * th_sel * w_item       # W1/W2 tiles, double-buffered
            b += 2 * (th_sel + Dp) * 4
        return b

    if weights_resident is None:
        resident = _tile_bytes(256, True) <= budget
    else:
        resident = bool(weights_resident)

    # --- row tile selection ---------------------------------------------------
    tm_sel = tm if tm is not None else (256 if resident else 1024)
    tm_sel = min(tm_sel, _round_up(M, row_align))
    tm_sel = max(row_align, _round_up(tm_sel, row_align))
    while _tile_bytes(tm_sel, resident) > budget and tm_sel > 2 * row_align:
        tm_sel = _round_up(tm_sel // 2, row_align)
    # >= 2 row tiles when rows allow, so the parallel axis spans both v7x cores.
    if _round_up(M, tm_sel) // tm_sel < 2 and M >= 2 * row_align:
        tm_sel = _round_up(-(-M // 2), row_align)
    Mp = _round_up(M, tm_sel)
    row_tiles = Mp // tm_sel

    # --- pad / cast operands --------------------------------------------------
    x2 = _pad_to(x.reshape(M, D).astype(cdtype), (Mp, Dp))
    w1p = _pad_to(w1.astype(cdtype), (Dp, Hp))
    b1p = _pad_to(b1.reshape(1, H).astype(jnp.float32), (1, Hp))
    w2p = _pad_to(w2.astype(cdtype), (Hp, Dp))
    b2p = _pad_to(b2.reshape(1, D).astype(jnp.float32), (1, Dp))

    # --- specs ----------------------------------------------------------------
    if resident:
        # Weights live in VMEM for the whole call; single-buffered (Buffered(1))
        # since their block index never changes.
        w1_spec = _block_spec((Dp, Hp), lambda i, k: (0, 0), buffer_count=1)
        b1_spec = pl.BlockSpec((1, Hp), lambda i, k: (0, 0))
        w2_spec = _block_spec((Hp, Dp), lambda i, k: (0, 0), buffer_count=1)
    else:
        w1_spec = pl.BlockSpec((Dp, th_sel), lambda i, k: (0, k))
        b1_spec = pl.BlockSpec((1, th_sel), lambda i, k: (0, k))
        w2_spec = pl.BlockSpec((th_sel, Dp), lambda i, k: (k, 0))

    needed = _tile_bytes(tm_sel, resident)
    vmem_limit = int(min(max(needed + (16 << 20), 32 << 20),
                         max(vmem_cap - (4 << 20), 32 << 20),
                         128 << 20))

    weight_stream_factor = 1 if resident else row_tiles
    cost = pl.CostEstimate(
        flops=4 * Mp * Dp * Hp,                     # two matmuls: 2*M*K*N each
        transcendentals=Mp * Hp,                    # one tanh per hidden elem
        bytes_accessed=int(Mp * Dp * w_item + Mp * Dp * out_item
                           + weight_stream_factor * 2 * Dp * Hp * w_item
                           + (Hp + Dp) * 4),
    )

    out_pad = pl.pallas_call(
        _make_ffn_kernel(th_sel, resident),
        out_shape=jax.ShapeDtypeStruct((Mp, Dp), out_dtype),
        grid_spec=pltpu.PrefetchScalarGridSpec(
            num_scalar_prefetch=0,
            grid=(row_tiles, Hp // th_sel),
            in_specs=[
                pl.BlockSpec((tm_sel, Dp), lambda i, k: (i, 0)),   # x rows
                w1_spec,                                           # W1
                b1_spec,                                           # b1
                w2_spec,                                           # W2
                pl.BlockSpec((1, Dp), lambda i, k: (0, 0)),        # b2
            ],
            out_specs=pl.BlockSpec((tm_sel, Dp), lambda i, k: (i, 0)),
            scratch_shapes=[pltpu.VMEM((tm_sel, Dp), jnp.float32)],
        ),
        compiler_params=pltpu.CompilerParams(
            dimension_semantics=("parallel", "arbitrary"),
            vmem_limit_bytes=vmem_limit,
        ),
        cost_estimate=cost,
    )(x2, w1p, b1p, w2p, b2p)

    return out_pad[:M, :D].reshape(B, T, D)


def feed_forward_ref(x, w1, b1, w2, b2):
    """Pure-JAX reference mirroring the PyTorch forward (0.8*GELU)."""
    h = x @ w1 + b1
    g = 0.8 * h * (1.0 + jnp.tanh(jnp.sqrt(2.0 / jnp.pi)
                                  * (h + 0.044715 * h ** 3)))
    return g @ w2 + b2


if __name__ == "__main__":
    # Small config consistent with the module: cfg = {'emb_dim': 32}
    B, T, D = 2, 8, 32
    H = 4 * D

    key = jax.random.PRNGKey(0)
    kx, k1, kb1, k2, kb2 = jax.random.split(key, 5)

    x = jax.random.normal(kx, (B, T, D), dtype=jnp.float32)
    # Deterministic synthetic params (nn.Linear-like scale), pre-transposed.
    w1 = jax.random.normal(k1, (D, H), dtype=jnp.float32) * (1.0 / jnp.sqrt(D))
    b1 = jax.random.normal(kb1, (H,), dtype=jnp.float32) * 0.01
    w2 = jax.random.normal(k2, (H, D), dtype=jnp.float32) * (1.0 / jnp.sqrt(H))
    b2 = jax.random.normal(kb2, (D,), dtype=jnp.float32) * 0.01

    ref = feed_forward_ref(x, w1, b1, w2, b2)

    # 1) Default path: weights VMEM-resident, f32 compute -> exact-ish.
    out = feed_forward_pallas(x, w1, b1, w2, b2)
    jax.block_until_ready(out)
    assert out.shape == (B, T, D)
    assert jnp.allclose(out, ref, atol=1e-4, rtol=1e-4), "resident mismatch"

    # 2) Streamed-weight fallback path (used when W1+W2 overflow VMEM, e.g.
    #    very large D on v7x) — same semantics, also checked tightly.
    out_s = feed_forward_pallas(x, w1, b1, w2, b2, weights_resident=False)
    jax.block_until_ready(out_s)
    assert jnp.allclose(out_s, ref, atol=1e-4, rtol=1e-4), "streamed mismatch"

    # 3) bf16-compute path (recommended for f32 models: MXU-native operands,
    #    f32 accumulation) — looser tolerance due to bf16 operand rounding.
    out_b = feed_forward_pallas(x, w1, b1, w2, b2, compute_dtype=jnp.bfloat16)
    jax.block_until_ready(out_b)
    assert jnp.allclose(out_b, ref, atol=8e-2, rtol=5e-2), "bf16 mismatch"

    print("KERNEL_OK")
</pallas_src>

<mosaic_0001>
module attributes {stable_mosaic.version = 11 : i64} {
  func.func @kernel(%arg0: i32, %arg1: i32, %arg2: memref<8x128xf32, #tpu.memory_space<vmem>>, %arg3: memref<128x128xf32, #tpu.memory_space<vmem>>, %arg4: memref<1x128xf32, #tpu.memory_space<vmem>>, %arg5: memref<128x128xf32, #tpu.memory_space<vmem>>, %arg6: memref<1x128xf32, #tpu.memory_space<vmem>>, %arg7: memref<8x128xf32, #tpu.memory_space<vmem>>, %arg8: memref<8x128xf32, #tpu.memory_space<vmem>>) attributes {dimension_semantics = [#tpu.dimension_semantics<parallel>, #tpu.dimension_semantics<arbitrary>], iteration_bounds = array<i64: 2, 1>, scalar_prefetch = 0 : i64, scratch_operands = 1 : i64, tpu.core_type = #tpu.core_type<tc>, window_params = [{transform_indices = @transform_0, window_bounds = array<i64: 8, 128>}, {pipeline_mode = #tpu.pipeline_mode<synchronous>, transform_indices = @transform_1, window_bounds = array<i64: 128, 128>}, {pipeline_mode = #tpu.pipeline_mode<synchronous>, transform_indices = @transform_2, window_bounds = array<i64: 1, 128>}, {pipeline_mode = #tpu.pipeline_mode<synchronous>, transform_indices = @transform_3, window_bounds = array<i64: 128, 128>}, {pipeline_mode = #tpu.pipeline_mode<synchronous>, transform_indices = @transform_4, window_bounds = array<i64: 1, 128>}, {transform_indices = @transform_5, window_bounds = array<i64: 8, 128>}]} {
    %c0_i32 = arith.constant 0 : i32
    %0 = arith.cmpi eq, %arg1, %c0_i32 : i32
    %1 = arith.extui %0 : i1 to i32
    %c0_i32_0 = arith.constant 0 : i32
    %2 = arith.cmpi ne, %1, %c0_i32_0 : i32
    scf.if %2 {
      %c0_16 = arith.constant 0 : index
      %c0_17 = arith.constant 0 : index
      %34 = vector.load %arg6[%c0_16, %c0_17] : memref<1x128xf32, #tpu.memory_space<vmem>>, vector<1x128xf32>
      %35 = vector.shape_cast %34 : vector<1x128xf32> to vector<1x128xf32>
      %36 = vector.broadcast %35 : vector<1x128xf32> to vector<8x128xf32>
      %c0_18 = arith.constant 0 : index
      %c0_19 = arith.constant 0 : index
      %37 = vector.load %arg8[%c0_18, %c0_19] : memref<8x128xf32, #tpu.memory_space<vmem>>, vector<8x128xf32>
      tpu.vector_store %arg8[%c0_18, %c0_19], %36 {strides = array<i32>} : memref<8x128xf32, #tpu.memory_space<vmem>>, vector<8x128xf32>,
    } else {
    }
    %c128_i32 = arith.constant 128 : i32
    %3 = arith.muli %arg1, %c128_i32 : i32
    %4 = tpu.assume_multiple %3, 128 : i32
    %c0 = arith.constant 0 : index
    %5 = arith.index_cast %4 : i32 to index
    %6 = vector.load %arg3[%c0, %5] : memref<128x128xf32, #tpu.memory_space<vmem>>, vector<128x128xf32>
    %c0_1 = arith.constant 0 : index
    %7 = arith.index_cast %4 : i32 to index
    %8 = vector.load %arg4[%c0_1, %7] : memref<1x128xf32, #tpu.memory_space<vmem>>, vector<1x128xf32>
    %9 = arith.index_cast %4 : i32 to index
    %c0_2 = arith.constant 0 : index
    %10 = vector.load %arg5[%9, %c0_2] : memref<128x128xf32, #tpu.memory_space<vmem>>, vector<128x128xf32>
    %c0_3 = arith.constant 0 : index
    %c0_4 = arith.constant 0 : index
    %11 = vector.load %arg2[%c0_3, %c0_4] : memref<8x128xf32, #tpu.memory_space<vmem>>, vector<8x128xf32>
    %cst = arith.constant dense<0.000000e+00> : vector<8x128xf32>
    %12 = tpu.matmul %11, %6, %cst {dimension_numbers = #tpu.dot_dimension_numbers<[1], [0], [0], [1], [0, 0, 1, 1], [], []>} : vector<8x128xf32>, vector<128x128xf32>, vector<8x128xf32> -> vector<8x128xf32>
    %13 = vector.broadcast %8 : vector<1x128xf32> to vector<8x128xf32>
    %14 = arith.addf %12, %13 : vector<8x128xf32>
    %15 = arith.mulf %14, %14 : vector<8x128xf32>
    %cst_5 = arith.constant 0.0356774069 : f32
    %16 = vector.broadcast %cst_5 : f32 to vector<8x128xf32>
    %17 = arith.mulf %16, %15 : vector<8x128xf32>
    %cst_6 = arith.constant 0.797884583 : f32
    %18 = vector.broadcast %cst_6 : f32 to vector<8x128xf32>
    %19 = arith.addf %18, %17 : vector<8x128xf32>
    %20 = arith.mulf %14, %19 : vector<8x128xf32>
    %21 = math.tanh %20 : vector<8x128xf32>
    %cst_7 = arith.constant 8.000000e-01 : f32
    %22 = vector.broadcast %cst_7 : f32 to vector<8x128xf32>
    %23 = arith.mulf %22, %14 : vector<8x128xf32>
    %cst_8 = arith.constant 1.000000e+00 : f32
    %24 = vector.broadcast %cst_8 : f32 to vector<8x128xf32>
    %25 = arith.addf %24, %21 : vector<8x128xf32>
    %26 = arith.mulf %23, %25 : vector<8x128xf32>
    %c0_9 = arith.constant 0 : index
    %c0_10 = arith.constant 0 : index
    %27 = vector.load %arg8[%c0_9, %c0_10] : memref<8x128xf32, #tpu.memory_space<vmem>>, vector<8x128xf32>
    %cst_11 = arith.constant dense<0.000000e+00> : vector<8x128xf32>
    %28 = tpu.matmul %26, %10, %cst_11 {dimension_numbers = #tpu.dot_dimension_numbers<[1], [0], [0], [1], [0, 0, 1, 1], [], []>} : vector<8x128xf32>, vector<128x128xf32>, vector<8x128xf32> -> vector<8x128xf32>
    %29 = arith.addf %27, %28 : vector<8x128xf32>
    %c0_12 = arith.constant 0 : index
    %c0_13 = arith.constant 0 : index
    %30 = vector.load %arg8[%c0_12, %c0_13] : memref<8x128xf32, #tpu.memory_space<vmem>>, vector<8x128xf32>
    tpu.vector_store %arg8[%c0_12, %c0_13], %29 {strides = array<i32>} : memref<8x128xf32, #tpu.memory_space<vmem>>, vector<8x128xf32>,
    %c0_i32_14 = arith.constant 0 : i32
    %31 = arith.cmpi eq, %arg1, %c0_i32_14 : i32
    %32 = arith.extui %31 : i1 to i32
    %c0_i32_15 = arith.constant 0 : i32
    %33 = arith.cmpi ne, %32, %c0_i32_15 : i32
    scf.if %33 {
      %c0_16 = arith.constant 0 : index
      %c0_17 = arith.constant 0 : index
      %34 = vector.load %arg8[%c0_16, %c0_17] : memref<8x128xf32, #tpu.memory_space<vmem>>, vector<8x128xf32>
      %c0_18 = arith.constant 0 : index
      %c0_19 = arith.constant 0 : index
      %35 = vector.load %arg7[%c0_18, %c0_19] : memref<8x128xf32, #tpu.memory_space<vmem>>, vector<8x128xf32>
      tpu.vector_store %arg7[%c0_18, %c0_19], %34 {strides = array<i32>} : memref<8x128xf32, #tpu.memory_space<vmem>>, vector<8x128xf32>,
    } else {
    }
    return
  }
  func.func @transform_0(%arg0: i32, %arg1: i32) -> (i32, i32) {
    %c0_i32 = arith.constant 0 : i32
    %c0_i32_0 = arith.constant 0 : i32
    return %arg0, %c0_i32 : i32, i32
  }
  func.func @transform_1(%arg0: i32, %arg1: i32) -> (i32, i32) {
    %c0_i32 = arith.constant 0 : i32
    %c0_i32_0 = arith.constant 0 : i32
    %c0_i32_1 = arith.constant 0 : i32
    return %c0_i32, %c0_i32_0 : i32, i32
  }
  func.func @transform_2(%arg0: i32, %arg1: i32) -> (i32, i32) {
    %c0_i32 = arith.constant 0 : i32
    %c0_i32_0 = arith.constant 0 : i32
    %c0_i32_1 = arith.constant 0 : i32
    return %c0_i32, %c0_i32_0 : i32, i32
  }
  func.func @transform_3(%arg0: i32, %arg1: i32) -> (i32, i32) {
    %c0_i32 = arith.constant 0 : i32
    %c0_i32_0 = arith.constant 0 : i32
    %c0_i32_1 = arith.constant 0 : i32
    return %c0_i32, %c0_i32_0 : i32, i32
  }
  func.func @transform_4(%arg0: i32, %arg1: i32) -> (i32, i32) {
    %c0_i32 = arith.constant 0 : i32
    %c0_i32_0 = arith.constant 0 : i32
    %c0_i32_1 = arith.constant 0 : i32
    return %c0_i32, %c0_i32_0 : i32, i32
  }
  func.func @transform_5(%arg0: i32, %arg1: i32) -> (i32, i32) {
    %c0_i32 = arith.constant 0 : i32
    %c0_i32_0 = arith.constant 0 : i32
    return %arg0, %c0_i32 : i32, i32
  }
}

</mosaic_0001>

<bundles_post_ra>
// kernel: tpu_custom_call.1
= control target key start
LH: loop header
LB: loop body
LE: loop exit
PB: predicated region body
PF: predicated region fallthrough
CT: control target
= control target key end

     0   :  { %10 = vsyncpa [#allocation4], 0  ;;  %s1363_s0 = inlined_call_operand.hbm [shape: f32[16,128], index: 0, kind: input, shape index: {}]   ;;  %s1364_s1 = inlined_call_operand.hbm [shape: f32[128,128], index: 1, kind: input, shape index: {}]   ;;  %s1365_s2 = inlined_call_operand.vmem [shape: f32[1,128], index: 2, kind: input, shape index: {}]   ;;  %s1366_s3 = inlined_call_operand.hbm [shape: f32[128,128], index: 3, kind: input, shape index: {}]   ;;  %s1367_s4 = inlined_call_operand.vmem [shape: f32[1,128], index: 4, kind: input, shape index: {}]   ;;  %s1368_s5 = inlined_call_operand.hbm [shape: f32[16,128], index: 5, kind: output, shape index: {}]  }
   0x1   :  { %12 = vsyncpa [#allocation4 + $0x1], 0 }
   0x2   :  { %13 = vsyncpa [#allocation7], 0 }
   0x3   :  { %14 = vsyncpa [#allocation5], 0 }
   0x4   :  { %16 = vsyncpa [#allocation5 + $0x1], 0  ;;  %s1084_s18 = smov 0   ;;  %s1086_s19 = smov 0  }
   0x5   :  { %s1088_s20 = smov 0   ;;  %s1090_s21 = smov 0  }
   0x6   :  { %s1092_s22 = smov 0   ;;  %s1094_s23 = smov 0  }
   0x7 LB: > { %s610_s24 = sadd.s32 4294967295, %s1043_s23   ;;  %s611_s25 = sadd.s32 4294967294, %s1043_s23   ;;  %s1043_s23 = sphi %s1094_s23, %s22_s23   ;;  %s1039_s22 = sphi %s1092_s22, %s1390_s22   ;;  %s1035_s21 = sphi %s1090_s21, %s1389_s21   ;;  %s1031_s20 = sphi %s1088_s20, %s1388_s20   ;;  %s1027_s19 = sphi %s1086_s19, %s1387_s19   ;;  %s1023_s18 = sphi %s1084_s18, %s1386_s18  }
   0x8   : > { %p54_p0 = scmp.ne.s32.totalorder %s1027_s19, %s1023_s18  ;;  %p1118_p1 = scmp.eq.s32.totalorder %s610_s24, 0 }
   0x9   : > { %p1122_p2 = scmp.eq.s32.totalorder %s610_s24, 1  ;;  %p168_p3 = scmp.eq.s32.totalorder %s611_s25, 1 }
   0xa   : > { %s1373_s26 = scalar_select %p1118_p1, 1, 0 }
   0xb   : > { %p1128_p4 = por %p1118_p1, %p54_p0  ;;  %p612_p5 = scmp.ge.s32.totalorder %s1043_s23, 1 }
   0xc   : > { %p1133_p6 = por %p168_p3, %p54_p0  ;;  %p175_p7 = scmp.lt.s32.totalorder %s1043_s23, 3 }
   0xd   : > { %s1375_s28 = scalar_select %p1128_p4, 1, 0 }
   0xe   : > { %s1376_s29 = scalar_select %p1133_p6, 1, 0 }
   0xf   : > { %p1138_p8 = pnand %p612_p5, %p175_p7  ;;  %s1045_s6 = smov [#allocation6]  }
  0x10   : > { %s187_s7 = sshll.u32 %s1045_s6, 4  ;;  %s1046_s9 = smov [#allocation8]   ;;  %s1142_s7 = int_to_ptr.vmem [resolvable:$true] %s187_s7 }
  0x11   : > { %p793_p9 = pneg %p1138_p8  ;;  %s203_s10 = sshll.u32 %s1046_s9, 4  ;;  %s1153_s10 = int_to_ptr.vmem [resolvable:$true] %s203_s10 }
  0x12   : > { %s871_s13 = scalar_lea.hbm %s1364_s1, 2048 }
  0x13   : > { %p1149_p11 = pnand %p793_p9, %p1118_p1  ;;  %p872_p12 = scmp.ne.s32.totalorder %s1364_s1, %s871_s13 }
  0x14   : > { %p878_p5 = scmp.lt.u32.totalorder %s871_s13, %s1364_s1 }
  0x15   : > { %p873_p13 = pneg %p1149_p11 }
  0x17   : > { %p874_p0 = pnand %p873_p13, %p872_p12 }
  0x19   : > { %p875_p3 = pneg %p874_p0 }
  0x1b   : > { %p880_p7 = pnand %p878_p5, %p875_p3 }
  0x1d   : > { %883 = shalt.err (!%p880_p7)
}
  0x1e   : > { %s884_s24 = scalar_lea.vmem %s1142_s7, 2048  ;;  %p892_p1 = scmp.lt.s32.totalorder %s1142_s7, %s1142_s7 }
  0x1f   : > { %p885_p9 = scmp.ne.s32.totalorder %s1142_s7, %s884_s24  ;;  %p893_p12 = scmp.lt.s32.totalorder %s884_s24, %s884_s24 }
  0x21   : > { %p887_p10 = pnand %p885_p9, %p873_p13  ;;  %p894_p0 = por %p893_p12, %p892_p1 }
  0x23   : > { %p888_p6 = pneg %p887_p10 }
  0x25   : > { %p895_p4 = pnand %p894_p0, %p888_p6 }
  0x27   : > { %898 = shalt.err (!%p895_p4)
}
  0x28   : > { %s1047_s25 = smov 128   ;;  %s1048_s6 = smov 8  }
  0x29   : > { %796 = dma.hbm_to_vmem [thread:$0]  (!%p1149_p11), %s1364_s1, 2048, %s1142_s7, [#allocation7], %s1047_s25, %s1047_s25, %s1048_s6  }
  0x2a   : > { %s899_s14 = scalar_lea.hbm %s1366_s3, 2048 }
  0x2b   : > { %p900_p1 = scmp.ne.s32.totalorder %s1366_s3, %s899_s14  ;;  %p906_p10 = scmp.lt.u32.totalorder %s899_s14, %s1366_s3 }
  0x2d   : > { %p902_p4 = pnand %p900_p1, %p873_p13 }
  0x2f   : > { %p903_p6 = pneg %p902_p4 }
  0x31   : > { %p908_p3 = pnand %p906_p10, %p903_p6 }
  0x33   : > { %911 = shalt.err (!%p908_p3)
}
  0x34   : > { %s912_s7 = scalar_lea.vmem %s1153_s10, 2048  ;;  %p920_p12 = scmp.lt.s32.totalorder %s1153_s10, %s1153_s10 }
  0x35   : > { %p913_p5 = scmp.ne.s32.totalorder %s1153_s10, %s912_s7  ;;  %p921_p0 = scmp.lt.s32.totalorder %s912_s7, %s912_s7 }
  0x37   : > { %p915_p7 = pnand %p913_p5, %p873_p13  ;;  %p922_p1 = por %p921_p0, %p920_p12 }
  0x39   : > { %p916_p9 = pneg %p915_p7 }
  0x3b   : > { %p923_p4 = pnand %p922_p1, %p916_p9 }
  0x3d   : > { %926 = shalt.err (!%p923_p4)
}
  0x3e   : > { %799 = dma.hbm_to_vmem [thread:$0]  (!%p1149_p11), %s1366_s3, 2048, %s1153_s10, [#allocation7], %s1047_s25, %s1047_s25, %s1048_s6  }
  0x3f   : > { %s34_s12 = sadd.s32 1, %s1039_s22  ;;  %s41_s13 = sadd.s32 1, %s1031_s20 }
  0x40   : > { %p36_p13 = scmp.ge.s32.totalorder %s34_s12, 2  ;;  %p48_p6 = scmp.ne.s32.totalorder %s1031_s20, %s1027_s19 }
  0x41   : > { %p49_p10 = scmp.eq.s32.totalorder %s1043_s23, 0  ;;  %p810_p3 = scmp.lt.s32.totalorder %s1043_s23, 2 }
  0x42   : > { %s1392_s12 = smov (%p36_p13, %s34_s12), 0  ;;  %p1217_p7 = por %p1122_p2, %p48_p6 }
  0x43   : > { %p50_p5 = por %p49_p10, %p48_p6  ;;  %s38_s14 = ssub.s32 %s1039_s22, %s1392_s12 }
  0x44   : > { %s1379_s8 = scalar_select %p1217_p7, 1, 0 }
  0x45   : > { %s220_s15 = sand.u32 1, %s1031_s20   ;;  %p39_p9 = scmp.eq.s32.totalorder %s38_s14, 0 }
  0x46   : > { %s616_s10 = sshll.u32 %s220_s15, 3  ;;  %s617_s25 = sshll.u32 %s1039_s22, 7 }
  0x47   : > { %s1226_s6 = scalar_select %p39_p9, %s1031_s20, %s41_s13  }
  0x48   : > { %s1231_s24 = scalar_lea.hbm %s1363_s0, %s617_s25  ;;  %s224_s27 = scalar_lea.vmem [#allocation3], %s616_s10 }
  0x49   : > { %s231_s7 = sshll.u32 %s224_s27, 4  ;;  %p1235_p2 = pnand %p810_p3, %p50_p5  ;;  %s1239_s7 = int_to_ptr.vmem [resolvable:$true] %s231_s7 }
  0x4a   : > { %s221_s11 = scalar_lea.sflag [#allocation4], %s220_s15  ;;  %s927_s13 = scalar_lea.hbm %s1231_s24, 128 }
  0x4b   : > { %p928_p11 = scmp.ne.s32.totalorder %s1231_s24, %s927_s13  ;;  %p929_p12 = pneg %p1235_p2 }
  0x4c   : > { %s932_s25 = scalar_lea.hbm %s1363_s0, 256  ;;  %p933_p4 = scmp.lt.u32.totalorder %s1231_s24, %s1363_s0 }
  0x4d   : > { %p930_p0 = pnand %p929_p12, %p928_p11  ;;  %p934_p13 = scmp.lt.u32.totalorder %s932_s25, %s927_s13 }
  0x4e   : > { %p936_p10 = scmp.lt.u32.totalorder %s927_s13, %s1231_s24 }
  0x4f   : > { %p931_p1 = pneg %p930_p0  ;;  %p935_p6 = por %p934_p13, %p933_p4 }
  0x51   : > { %p937_p3 = por %p936_p10, %p935_p6 }
  0x53   : > { %p938_p5 = pnand %p937_p3, %p931_p1 }
  0x55   : > { %941 = shalt.err (!%p938_p5)
}
  0x56   : > { %s942_s15 = scalar_lea.vmem %s1239_s7, 128  ;;  %s1049_s27 = smov [#allocation3]  }
  0x57   : > { %p943_p9 = scmp.ne.s32.totalorder %s1239_s7, %s942_s15  ;;  %s947_s14 = sshll.u32 %s1049_s27, 4  ;;  %s948_s14 = int_to_ptr.vmem [resolvable:$false] %s947_s14 }
  0x58   : > { %s949_s10 = scalar_lea.vmem %s948_s14, 256  ;;  %p950_p7 = scmp.lt.s32.totalorder %s1239_s7, %s948_s14 }
  0x59   : > { %p945_p11 = pnand %p943_p9, %p929_p12  ;;  %p951_p4 = scmp.lt.s32.totalorder %s949_s10, %s942_s15 }
  0x5b   : > { %p946_p0 = pneg %p945_p11  ;;  %p952_p13 = por %p951_p4, %p950_p7 }
  0x5d   : > { %p953_p6 = pnand %p952_p13, %p946_p0 }
  0x5f   : > { %956 = shalt.err (!%p953_p6)
}
  0x60   : > { %803 = dma.hbm_to_vmem [thread:$0]  (!%p1235_p2), %s1231_s24, 128, %s1239_s7, %s221_s11  }
  0x61   : > { %240 = sbr.rel (%p1138_p8) target bundleno = 608 (0x260), region = 40  ;;  %s1269_s13 = sand.u32 (!%p1138_p8), 1, %s1027_s19  }
  0x62   : > { %s619_s25 = sshll.u32 (!%p1138_p8), %s1269_s13, 3  ;;  %s243_s16 = scalar_lea.sflag (!%p1138_p8), [#allocation4], %s1269_s13 }
  0x63   : > { %s1275_s17 = scalar_lea.vmem (!%p1138_p8), [#allocation3], %s619_s25  ;;  %p1381_p7 = scmp.ne.s32.totalorder (!%p1138_p8), %s1375_s28, 0 }
  0x68   : > { %1010 = dma.done.wait (%p1381_p7), %s243_s16, 128  }
  0x69   : > { %1012 = vsyncadd (%p1381_p7), %s243_s16, 4294967168  ;;  %p1382_p2 = scmp.ne.s32.totalorder %s1373_s26, 0 }
  0x6b   : > { %1014 = dma.done.wait (%p1382_p2), [#allocation7], 4096  }
  0x6c   : > { %1016 = vsyncadd (%p1382_p2), [#allocation7], 4294963200  ;;  %v1050_v0 = vmov 0.0|0.0   ;;  %vm1051_vm0 = vmmov 0   ;;  %v1052_v1 = vmov 0.0   ;;  %v297_v2 = vld [vmem:[#allocation6] sm:$0xff] }
  0x6d   : > { %733 = vmatprep.subr.bf16.mxu0 %v1050_v0  ;;  %695 = vmatprep.mubr.msk.f32.mxu0 %vm1051_vm0, %v1052_v1  ;;  %v298_v3 = vld [vmem:[#allocation6 + $0x8] sm:$0xff]  ;;  %v299_v4 = vld [vmem:[#allocation6 + $0x10] sm:$0xff]  ;;  %v300_v6 = vld [vmem:[#allocation6 + $0x18] sm:$0xff]  ;;  %s626_s7 = sshll.u32 %s1035_s21, 7  ;;  %s280_s9 = scalar_lea.vmem [#allocation9], %s619_s25 }
  0x6e   : > { %757 = vmatprep.subr.bf16.mxu1 %v1050_v0  ;;  %730 = vmatprep.mubr.msk.f32.mxu1 %vm1051_vm0, %v1052_v1  ;;  %v734_v5 = vpack.c.bf16 %v298_v3, %v297_v2  ;;  %v737_v7 = vpack.c.bf16 %v300_v6, %v299_v4  ;;  %v301_v8 = vld [vmem:[#allocation6 + $0x20] sm:$0xff]  ;;  %v302_v9 = vld [vmem:[#allocation6 + $0x28] sm:$0xff]  ;;  %v318_v12 = vld [vmem:[#allocation8 + $0x10] sm:$0xff]  ;;  %s509_s11 = sshll.u32 %s280_s9, 4  ;;  %s1314_s14 = scalar_lea.hbm %s1368_s5, %s626_s7  ;;  %s1316_s11 = int_to_ptr.vmem [resolvable:$true] %s509_s11 }
  0x6f   : > { %v316_v10 = vld [vmem:[#allocation8] sm:$0xff]  ;;  %v317_v11 = vld [vmem:[#allocation8 + $0x8] sm:$0xff]  ;;  %v319_v13 = vld [vmem:[#allocation8 + $0x18] sm:$0xff]  ;;  %v740_v14 = vpack.c.bf16 %v302_v9, %v301_v8  ;;  %s496_s10 = scalar_lea.sflag [#allocation5], %s1269_s13  ;;  %s957_s16 = scalar_lea.vmem %s1316_s11, 128 }
  0x70   : > { %735 = vmatpush3.bf16.msra.mxu0 %v734_v5  ;;  %v758_v15 = vpack.c.bf16 %v317_v11, %v316_v10  ;;  %v303_v16 = vld [vmem:[#allocation6 + $0x30] sm:$0xff]  ;;  %v304_v17 = vld [vmem:[#allocation6 + $0x38] sm:$0xff]  ;;  %v761_v18 = vpack.c.bf16 %v319_v13, %v318_v12  ;;  %v305_v20 = vld [vmem:[#allocation6 + $0x40] sm:$0xff]  ;;  %p958_p8 = scmp.ne.s32.totalorder %s1316_s11, %s957_s16  ;;  %p1383_p12 = scmp.ne.s32.totalorder %s1379_s8, 0 }
  0x71   : > { %736 = vmatprep.subr.bf16.mxu0 %v1050_v0  ;;  %v743_v19 = vpack.c.bf16 %v304_v17, %v303_v16  ;;  %v306_v21 = vld [vmem:[#allocation6 + $0x48] sm:$0xff]  ;;  %v307_v23 = vld [vmem:[#allocation6 + $0x50] sm:$0xff]  ;;  %v308_v24 = vld [vmem:[#allocation6 + $0x58] sm:$0xff]  ;;  %s1053_s21 = smov [#allocation9]  }
  0x72   : > { %759 = vmatpush3.bf16.msra.mxu1 %v758_v15  ;;  %v746_v22 = vpack.c.bf16 %v306_v21, %v305_v20  ;;  %v749_v25 = vpack.c.bf16 %v308_v24, %v307_v23  ;;  %v309_v26 = vld [vmem:[#allocation6 + $0x60] sm:$0xff]  ;;  %v310_v27 = vld [vmem:[#allocation6 + $0x68] sm:$0xff]  ;;  %v311_v29 = vld [vmem:[#allocation6 + $0x70] sm:$0xff]  ;;  %p959_p1 = pnand %p958_p8, %p1383_p12  ;;  %s961_s25 = sshll.u32 %s1053_s21, 4  ;;  %s962_s25 = int_to_ptr.vmem [resolvable:$false] %s961_s25 }
  0x73   : > { %760 = vmatprep.subr.bf16.mxu1 %v1050_v0  ;;  %v752_v28 = vpack.c.bf16 %v310_v27, %v309_v26  ;;  %v312_v30 = vld [vmem:[#allocation6 + $0x78] sm:$0xff]  ;;  %v320_v33 = vld [vmem:[#allocation8 + $0x20] sm:$0xff]  ;;  %v321_v34 = vld [vmem:[#allocation8 + $0x28] sm:$0xff]  ;;  %p964_p3 = scmp.lt.s32.totalorder %s1316_s11, %s962_s25 }
  0x74   : > { %738 = vmatpush3.bf16.msra.mxu0 %v737_v7  ;;  %v755_v31 = vpack.c.bf16 %v312_v30, %v311_v29  ;;  %v332_v32 = vld [vmem:[%s1275_s17] sm:$0xff]  ;;  %v764_v35 = vpack.c.bf16 %v321_v34, %v320_v33  ;;  %v324_v39 = vld [vmem:[#allocation8 + $0x40] sm:$0xff]  ;;  %v325_v40 = vld [vmem:[#allocation8 + $0x48] sm:$0xff]  ;;  %p960_p10 = pneg %p959_p1  ;;  %s963_s17 = scalar_lea.vmem %s962_s25, 256 }
  0x75   : > { %739 = vmatprep.subr.bf16.mxu0 %v1050_v0  ;;  %v322_v36 = vld [vmem:[#allocation8 + $0x30] sm:$0xff]  ;;  %v323_v37 = vld [vmem:[#allocation8 + $0x38] sm:$0xff]  ;;  %v770_v41 = vpack.c.bf16 %v325_v40, %v324_v39  ;;  %v328_v45 = vld [vmem:[#allocation8 + $0x60] sm:$0xff]  ;;  %p965_p5 = scmp.lt.s32.totalorder %s963_s17, %s957_s16 }
  0x76   : > { %762 = vmatpush3.bf16.msra.mxu1 %v761_v18  ;;  %v767_v38 = vpack.c.bf16 %v323_v37, %v322_v36  ;;  %v326_v42 = vld [vmem:[#allocation8 + $0x50] sm:$0xff]  ;;  %v327_v43 = vld [vmem:[#allocation8 + $0x58] sm:$0xff]  ;;  %v329_v46 = vld [vmem:[#allocation8 + $0x68] sm:$0xff] }
  0x77   : > { %763 = vmatprep.subr.bf16.mxu1 %v1050_v0  ;;  %v773_v44 = vpack.c.bf16 %v327_v43, %v326_v42  ;;  %v776_v47 = vpack.c.bf16 %v329_v46, %v328_v45  ;;  %v330_v48 = vld [vmem:[#allocation8 + $0x70] sm:$0xff]  ;;  %v331_v49 = vld [vmem:[#allocation8 + $0x78] sm:$0xff]  ;;  %p966_p9 = por %p965_p5, %p964_p3 }
  0x78   : > { %741 = vmatpush3.bf16.msra.mxu0 %v740_v14  ;;  %v779_v50 = vpack.c.bf16 %v331_v49, %v330_v48  ;;  %v624_v51 = vld [vmem:[%s1365_s2] ss:$0 sm:$0xff] }
  0x79   : > { %742 = vmatprep.subr.bf16.mxu0 %v1050_v0  ;;  %v623_v63 = vld [vmem:[%s1367_s4] ss:$0 sm:$0xff]  ;;  %p967_p11 = pnand %p966_p9, %p960_p10 }
  0x7a   : > { %765 = vmatpush3.bf16.msra.mxu1 %v764_v35 }
  0x7b   : > { %766 = vmatprep.subr.bf16.mxu1 %v1050_v0 }
  0x7c   : > { %744 = vmatpush3.bf16.msra.mxu0 %v743_v19 }
  0x7d   : > { %745 = vmatprep.subr.bf16.mxu0 %v1050_v0 }
  0x7e   : > { %768 = vmatpush3.bf16.msra.mxu1 %v767_v38 }
  0x7f   : > { %769 = vmatprep.subr.bf16.mxu1 %v1050_v0 }
  0x80   : > { %747 = vmatpush3.bf16.msra.mxu0 %v746_v22 }
  0x81   : > { %748 = vmatprep.subr.bf16.mxu0 %v1050_v0 }
  0x82   : > { %771 = vmatpush3.bf16.msra.mxu1 %v770_v41 }
  0x83   : > { %772 = vmatprep.subr.bf16.mxu1 %v1050_v0 }
  0x84   : > { %750 = vmatpush3.bf16.msra.mxu0 %v749_v25 }
  0x85   : > { %751 = vmatprep.subr.bf16.mxu0 %v1050_v0 }
  0x86   : > { %774 = vmatpush3.bf16.msra.mxu1 %v773_v44 }
  0x87   : > { %775 = vmatprep.subr.bf16.mxu1 %v1050_v0 }
  0x88   : > { %753 = vmatpush3.bf16.msra.mxu0 %v752_v28 }
  0x89   : > { %754 = vmatprep.subr.bf16.mxu0 %v1050_v0 }
  0x8a   : > { %777 = vmatpush3.bf16.msra.mxu1 %v776_v47 }
  0x8b   : > { %778 = vmatprep.subr.bf16.mxu1 %v1050_v0 }
  0x8c   : > { %756 = vmatpush3.bf16.msra.mxu0 %v755_v31 }
  0x8e   : > { %780 = vmatpush3.bf16.msra.mxu1 %v779_v50 }
  0x8f   : > { %696 = vmatmul.mubr.f32.vlgmr.msra.gmra.mrb[0].mxu0 %v332_v32 }
 0x162   : > { %v405_v52 = vpop.f32.mrb[0].mxu0 }
 0x163   : > { %v406_v53 = vadd.f32 %v624_v51, %v405_v52  ;;  %v697_v54 = vpop.f32.mrb[1].mxu0 }
 0x165   : > { %v409_v55 = vmul.f32 %v406_v53, %v406_v53  ;;  %v414_v60 = vmul.f32 0.8, %v406_v53 }
 0x167   : > { %v410_v56 = vmul.f32 0.035677407, %v409_v55 }
 0x169   : > { %v411_v57 = vadd.f32 0.7978846, %v410_v56 }
 0x16b   : > { %v412_v58 = vmul.f32 %v411_v57, %v406_v53 }
 0x16d   : > { %869 = vtanh.f32 %v412_v58 }
 0x177   : > { %v870_v59 = vpop.eup %869 }
 0x178   : > { %v415_v61 = vadd.f32 1.0, %v870_v59 }
 0x17a   : > { %v416_v62 = vmul.f32 %v415_v61, %v414_v60 }
 0x17c   : > { %731 = vmatmul.mubr.f32.vlgmr.msra.gmra.mrb[0].mxu1 %v416_v62 }
 0x24f   : > { %v484_v0 = vpop.f32.mrb[0].mxu1 }
 0x250   : > { %v488_v1 = vadd.f32 %v623_v63, %v484_v0  ;;  %v732_v2 = vpop.f32.mrb[1].mxu1 }
 0x252   : > { %494 = vst [vmem:[%s280_s9] sm:$0xff] %v488_v1 }
 0x253   : > { %970 = shalt.err (!%p967_p11)
}
 0x254   : > { %s971_s13 = scalar_lea.hbm %s1314_s14, 128  ;;  %s975_s30 = scalar_lea.hbm %s1368_s5, 256 }
 0x255   : > { %p972_p0 = scmp.ne.s32.totalorder %s1314_s14, %s971_s13  ;;  %p976_p6 = scmp.lt.u32.totalorder %s1314_s14, %s1368_s5 }
 0x256   : > { %p977_p7 = scmp.lt.u32.totalorder %s975_s30, %s971_s13  ;;  %p979_p8 = scmp.lt.u32.totalorder %s971_s13, %s1314_s14 }
 0x257   : > { %p973_p4 = pnand %p972_p0, %p1383_p12 }
 0x258   : > { %p978_p2 = por %p977_p7, %p976_p6 }
 0x259   : > { %p974_p13 = pneg %p973_p4 }
 0x25a   : > { %p980_p1 = por %p979_p8, %p978_p2 }
 0x25c   : > { %p981_p10 = pnand %p980_p1, %p974_p13 }
 0x25e   : > { %984 = shalt.err (!%p981_p10)
}
 0x25f   : > { %791 = dma.vmem_to_hbm [thread:$0]  (%p1383_p12), %s1316_s11, 128, %s1314_s14, %s496_s10  }
 0x260 PF: > { %s521_s9 = sand.u32 1, %s1023_s18   ;;  %p1384_p3 = scmp.ne.s32.totalorder %s1376_s29, 0 }
 0x261   : > { %p1385_p5 = scmp.ge.s32.totalorder %s1043_s23, 2  ;;  %s522_s15 = scalar_lea.sflag [#allocation5], %s521_s9 }
 0x263   : > { %p805_p9 = pnand %p1385_p5, %p1384_p3 }
 0x265   : > { %1018 = dma.done.wait (!%p805_p9), %s522_s15, 128  }
 0x266   : > { %1020 = vsyncadd (!%p805_p9), %s522_s15, 4294967168  ;;  %s22_s23 = sadd.s32 1, %s1043_s23   ;;  %s1386_s18 = smov %s1027_s19 }
 0x267   : > { %p19_p11 = scmp.ge.s32.totalorder %s22_s23, 4   ;;  %s1387_s19 = smov %s1031_s20 }
 0x268   : > { %s1388_s20 = smov %s1226_s6  ;;  %s1389_s21 = smov %s1039_s22 }
 0x269   : > { %s1390_s22 = smov %s1392_s12  ;;  %21 = sbr.rel (!%p19_p11) target bundleno = 7 (0x7), region = 104 }
 0x270   :  { %527 = vsyncpa [#allocation4], 1 }
 0x271   :  { %529 = vsyncpa [#allocation4 + $0x1], 1 }
 0x272   :  { %530 = vsyncpa [#allocation7], 1 }
 0x273   :  { %531 = vsyncpa [#allocation5], 1 }
 0x274   :  { %533 = vsyncpa [#allocation5 + $0x1], 1 }

</bundles_post_ra>
